<compile_context>
chip_gen: v7x
topology: tpu7x:2x2x1
jax: 0.10.0
libtpu: 0.0.40
codegen_flags: <defaults>
</compile_context>

<pallas_src>
import jax
import jax.numpy as jnp
from jax.experimental import pallas as pl
from jax.experimental.pallas import tpu as pltpu


def _nfe_model_kernel(t_ref, x_ref, w_ref, b_ref, tw_ref, y_ref):
    """One (batch n, spatial tile j) block: y = W @ x + b + t[n] * tw."""
    n = pl.program_id(0)
    t_n = t_ref[n]                            # scalar f32 read from SMEM
    x = x_ref[0]                              # (C, tl)  lanes = spatial
    w = w_ref[...]                            # (C, C)   w[c_out, c_in]
    bias = b_ref[...] + t_n * tw_ref[...]     # (C, 1), broadcasts over lanes

    c_dim = x.shape[0]
    if c_dim <= 8:
        # Tiny channel count: unrolled VPU FMAs, lane-dense everywhere; the
        # MXU would waste its 128/256-wide array on a 4x4 contraction.
        acc = bias
        for k in range(c_dim):
            acc = acc + w[:, k:k + 1] * x[k:k + 1, :]
    else:
        # Larger channel count: contract over the sublane axis; output stays
        # lane-dense so stores remain full vregs.
        acc = jnp.dot(w, x, preferred_element_type=jnp.float32) + bias

    y_ref[0] = acc.astype(y_ref.dtype)


def _pick_spatial_tile(L, C, itemsize=4, budget_bytes=2 << 20):
    """Largest lane-dense tile (multiple of 128, divides L) within ~budget."""
    if L % 128 != 0:
        return L                              # full row: block == full dim is legal
    max_tl = max(128, (budget_bytes // (C * itemsize)) // 128 * 128)
    tl = min(L, max_tl)
    while L % tl != 0:                        # terminates: 128 always divides L here
        tl -= 128
    return tl


def nfe_model_forward(x_nchw, t, w, b, tw):
    """Synthetic wrapped-model forward (NCHW in, NCHW out)."""
    N, C, H, W = x_nchw.shape
    L = H * W
    x3 = x_nchw.reshape(N, C, L)   # free view: NCHW is already spatial-contiguous

    tl = _pick_spatial_tile(L, C, jnp.dtype(x_nchw.dtype).itemsize)
    grid = (N, L // tl)

    # Keep the original W[k, c] convention by presenting the kernel w[c, k].
    w_cm = jnp.transpose(w).astype(jnp.float32)       # (C_out, C_in)
    b2 = b.reshape(C, 1).astype(jnp.float32)
    tw2 = tw.reshape(C, 1).astype(jnp.float32)
    t1 = t.astype(jnp.float32)

    y3 = pl.pallas_call(
        _nfe_model_kernel,
        grid_spec=pltpu.PrefetchScalarGridSpec(
            num_scalar_prefetch=0,
            grid=grid,
            in_specs=[
                pl.BlockSpec(memory_space=pltpu.MemorySpace.SMEM),   # t (N,) in SMEM
                pl.BlockSpec((1, C, tl), lambda n, j: (n, 0, j)),    # x tile
                pl.BlockSpec((C, C), lambda n, j: (0, 0)),           # W (constant block)
                pl.BlockSpec((C, 1), lambda n, j: (0, 0)),           # b
                pl.BlockSpec((C, 1), lambda n, j: (0, 0)),           # tw
            ],
            out_specs=pl.BlockSpec((1, C, tl), lambda n, j: (n, 0, j)),
        ),
        out_shape=jax.ShapeDtypeStruct((N, C, L), x_nchw.dtype),
        compiler_params=pltpu.CompilerParams(
            dimension_semantics=("parallel", "parallel")),
    )(t1, x3, w_cm, b2, tw2)

    return y3.reshape(N, C, H, W)


class NFECount:
    """JAX/Pallas port of the PyTorch NFECount wrapper."""

    def __init__(self, w, b, tw):
        self.w, self.b, self.tw = w, b, tw
        self.nfe = jnp.zeros((), jnp.float32)   # register_buffer('nfe', 0.0)

    def forward(self, x, t):
        # nfe += 1.0 is one scalar add; hoisted out of the kernel (removes a
        # padded (1,1) VMEM block / aliasing and keeps the grid 'parallel').
        self.nfe = self.nfe + 1.0
        return nfe_model_forward(x, t, self.w, self.b, self.tw)

    # forward_with_cfg / forward_with_adacfg dispatch to other methods of the
    # wrapped model; the synthetic model has a single forward, so they share it.
    # TODO(synk): plug real cfg / adacfg model variants if a concrete wrapped
    # model is provided.
    forward_with_cfg = forward
    forward_with_adacfg = forward

    def reset_nfe(self):
        self.nfe = jnp.zeros((), jnp.float32)


if __name__ == "__main__":
    key = jax.random.PRNGKey(0)
    kx, kt, kw, kb, ktw = jax.random.split(key, 5)

    N, C, H, W = 2, 4, 16, 16
    x = jax.random.normal(kx, (N, C, H, W), jnp.float32)
    t = jax.random.uniform(kt, (N,), jnp.float32)

    # Deterministic synthetic "model" parameters (W[k, c] convention).
    w = jax.random.normal(kw, (C, C), jnp.float32) * 0.1
    b = jax.random.normal(kb, (C,), jnp.float32) * 0.01
    tw = jax.random.normal(ktw, (C,), jnp.float32) * 0.01

    mod = NFECount(w, b, tw)
    y = mod.forward(x, t)
    jax.block_until_ready(y)
    jax.block_until_ready(mod.nfe)

    # Pure-JAX reference: y[n,c,h,w] = sum_k W[k,c] x[n,k,h,w] + b[c] + t[n] tw[c]
    y_ref = (jnp.einsum('kc,nkl->ncl', w, x.reshape(N, C, H * W))
             + b[None, :, None]
             + t[:, None, None] * tw[None, :, None]).reshape(N, C, H, W)
    assert y.shape == (N, C, H, W)
    assert jnp.allclose(y, y_ref, atol=1e-5), "model output mismatch"
    assert float(mod.nfe) == 1.0, "nfe counter mismatch"

    # Call twice more; nfe should track evaluations.
    mod.forward(x, t)
    mod.forward_with_cfg(x, t)
    jax.block_until_ready(mod.nfe)
    assert float(mod.nfe) == 3.0
    mod.reset_nfe()
    assert float(mod.nfe) == 0.0

    print("KERNEL_OK")
</pallas_src>

<mosaic_0001>
module attributes {stable_mosaic.version = 11 : i64} {
  func.func @_nfe_model_kernel(%arg0: i32, %arg1: i32, %arg2: memref<2xf32, #tpu.memory_space<smem>>, %arg3: memref<1x4x256xf32, #tpu.memory_space<vmem>>, %arg4: memref<4x4xf32, #tpu.memory_space<vmem>>, %arg5: memref<4x1xf32, #tpu.memory_space<vmem>>, %arg6: memref<4x1xf32, #tpu.memory_space<vmem>>, %arg7: memref<1x4x256xf32, #tpu.memory_space<vmem>>) attributes {dimension_semantics = [#tpu.dimension_semantics<parallel>, #tpu.dimension_semantics<parallel>], iteration_bounds = array<i64: 2, 1>, scalar_prefetch = 0 : i64, scratch_operands = 0 : i64, tpu.core_type = #tpu.core_type<tc>, window_params = [{transform_indices = @transform_0, window_bounds = array<i64: 2>}, {transform_indices = @transform_1, window_bounds = array<i64: 1, 4, 256>}, {pipeline_mode = #tpu.pipeline_mode<synchronous>, transform_indices = @transform_2, window_bounds = array<i64: 4, 4>}, {pipeline_mode = #tpu.pipeline_mode<synchronous>, transform_indices = @transform_3, window_bounds = array<i64: 4, 1>}, {pipeline_mode = #tpu.pipeline_mode<synchronous>, transform_indices = @transform_4, window_bounds = array<i64: 4, 1>}, {transform_indices = @transform_5, window_bounds = array<i64: 1, 4, 256>}]} {
    %0 = arith.index_cast %arg0 : i32 to index
    %1 = memref.load %arg2[%0] : memref<2xf32, #tpu.memory_space<smem>>
    %c0 = arith.constant 0 : index
    %c0_0 = arith.constant 0 : index
    %c0_1 = arith.constant 0 : index
    %2 = vector.load %arg3[%c0, %c0_0, %c0_1] : memref<1x4x256xf32, #tpu.memory_space<vmem>>, vector<1x4x256xf32>
    %3 = vector.shape_cast %2 : vector<1x4x256xf32> to vector<4x256xf32>
    %c0_2 = arith.constant 0 : index
    %c0_3 = arith.constant 0 : index
    %4 = vector.load %arg4[%c0_2, %c0_3] : memref<4x4xf32, #tpu.memory_space<vmem>>, vector<4x4xf32>
    %c0_4 = arith.constant 0 : index
    %c0_5 = arith.constant 0 : index
    %5 = vector.load %arg5[%c0_4, %c0_5] : memref<4x1xf32, #tpu.memory_space<vmem>>, vector<4x1xf32>
    %c0_6 = arith.constant 0 : index
    %c0_7 = arith.constant 0 : index
    %6 = vector.load %arg6[%c0_6, %c0_7] : memref<4x1xf32, #tpu.memory_space<vmem>>, vector<4x1xf32>
    %7 = vector.broadcast %1 : f32 to vector<4x1xf32>
    %8 = arith.mulf %7, %6 : vector<4x1xf32>
    %9 = arith.addf %5, %8 : vector<4x1xf32>
    %10 = vector.extract_strided_slice %4 {offsets = [0, 0], sizes = [4, 1], strides = [1, 1]} : vector<4x4xf32> to vector<4x1xf32>
    %11 = vector.extract_strided_slice %3 {offsets = [0, 0], sizes = [1, 256], strides = [1, 1]} : vector<4x256xf32> to vector<1x256xf32>
    %12 = vector.broadcast %10 : vector<4x1xf32> to vector<4x256xf32>
    %13 = vector.broadcast %11 : vector<1x256xf32> to vector<4x256xf32>
    %14 = arith.mulf %12, %13 : vector<4x256xf32>
    %15 = vector.broadcast %9 : vector<4x1xf32> to vector<4x256xf32>
    %16 = arith.addf %15, %14 : vector<4x256xf32>
    %17 = vector.extract_strided_slice %4 {offsets = [0, 1], sizes = [4, 1], strides = [1, 1]} : vector<4x4xf32> to vector<4x1xf32>
    %18 = vector.extract_strided_slice %3 {offsets = [1, 0], sizes = [1, 256], strides = [1, 1]} : vector<4x256xf32> to vector<1x256xf32>
    %19 = vector.broadcast %17 : vector<4x1xf32> to vector<4x256xf32>
    %20 = vector.broadcast %18 : vector<1x256xf32> to vector<4x256xf32>
    %21 = arith.mulf %19, %20 : vector<4x256xf32>
    %22 = arith.addf %16, %21 : vector<4x256xf32>
    %23 = vector.extract_strided_slice %4 {offsets = [0, 2], sizes = [4, 1], strides = [1, 1]} : vector<4x4xf32> to vector<4x1xf32>
    %24 = vector.extract_strided_slice %3 {offsets = [2, 0], sizes = [1, 256], strides = [1, 1]} : vector<4x256xf32> to vector<1x256xf32>
    %25 = vector.broadcast %23 : vector<4x1xf32> to vector<4x256xf32>
    %26 = vector.broadcast %24 : vector<1x256xf32> to vector<4x256xf32>
    %27 = arith.mulf %25, %26 : vector<4x256xf32>
    %28 = arith.addf %22, %27 : vector<4x256xf32>
    %29 = vector.extract_strided_slice %4 {offsets = [0, 3], sizes = [4, 1], strides = [1, 1]} : vector<4x4xf32> to vector<4x1xf32>
    %30 = vector.extract_strided_slice %3 {offsets = [3, 0], sizes = [1, 256], strides = [1, 1]} : vector<4x256xf32> to vector<1x256xf32>
    %31 = vector.broadcast %29 : vector<4x1xf32> to vector<4x256xf32>
    %32 = vector.broadcast %30 : vector<1x256xf32> to vector<4x256xf32>
    %33 = arith.mulf %31, %32 : vector<4x256xf32>
    %34 = arith.addf %28, %33 : vector<4x256xf32>
    %c0_8 = arith.constant 0 : index
    %c0_9 = arith.constant 0 : index
    %c0_10 = arith.constant 0 : index
    %35 = vector.load %arg7[%c0_8, %c0_9, %c0_10] : memref<1x4x256xf32, #tpu.memory_space<vmem>>, vector<1x4x256xf32>
    %36 = vector.shape_cast %35 : vector<1x4x256xf32> to vector<4x256xf32>
    %37 = vector.shape_cast %34 : vector<4x256xf32> to vector<1x4x256xf32>
    tpu.vector_store %arg7[%c0_8, %c0_9, %c0_10], %37 {strides = array<i32>} : memref<1x4x256xf32, #tpu.memory_space<vmem>>, vector<1x4x256xf32>,
    return
  }
  func.func @transform_0(%arg0: i32, %arg1: i32) -> i32 {
    %c0_i32 = arith.constant 0 : i32
    %c0_i32_0 = arith.constant 0 : i32
    return %c0_i32 : i32
  }
  func.func @transform_1(%arg0: i32, %arg1: i32) -> (i32, i32, i32) {
    %c0_i32 = arith.constant 0 : i32
    %c0_i32_0 = arith.constant 0 : i32
    return %arg0, %c0_i32, %arg1 : i32, i32, i32
  }
  func.func @transform_2(%arg0: i32, %arg1: i32) -> (i32, i32) {
    %c0_i32 = arith.constant 0 : i32
    %c0_i32_0 = arith.constant 0 : i32
    %c0_i32_1 = arith.constant 0 : i32
    return %c0_i32, %c0_i32_0 : i32, i32
  }
  func.func @transform_3(%arg0: i32, %arg1: i32) -> (i32, i32) {
    %c0_i32 = arith.constant 0 : i32
    %c0_i32_0 = arith.constant 0 : i32
    %c0_i32_1 = arith.constant 0 : i32
    return %c0_i32, %c0_i32_0 : i32, i32
  }
  func.func @transform_4(%arg0: i32, %arg1: i32) -> (i32, i32) {
    %c0_i32 = arith.constant 0 : i32
    %c0_i32_0 = arith.constant 0 : i32
    %c0_i32_1 = arith.constant 0 : i32
    return %c0_i32, %c0_i32_0 : i32, i32
  }
  func.func @transform_5(%arg0: i32, %arg1: i32) -> (i32, i32, i32) {
    %c0_i32 = arith.constant 0 : i32
    %c0_i32_0 = arith.constant 0 : i32
    return %arg0, %c0_i32, %arg1 : i32, i32, i32
  }
}

</mosaic_0001>

<bundles_post_ra>
// kernel: tpu_custom_call.1
= control target key start
LH: loop header
LB: loop body
LE: loop exit
PB: predicated region body
PF: predicated region fallthrough
CT: control target
= control target key end

     0   :  { %10 = vsyncpa [#allocation5], 0  ;;  %s995_s0 = inlined_call_operand.vmem [shape: f32[2], index: 0, kind: input, shape index: {}]   ;;  %s996_s1 = inlined_call_operand.hbm [shape: f32[2,4,256], index: 1, kind: input, shape index: {}]   ;;  %s997_s2 = inlined_call_operand.vmem [shape: f32[4,4], index: 2, kind: input, shape index: {}]   ;;  %s998_s3 = inlined_call_operand.vmem [shape: f32[4,1], index: 3, kind: input, shape index: {}]   ;;  %s999_s4 = inlined_call_operand.vmem [shape: f32[4,1], index: 4, kind: input, shape index: {}]   ;;  %s1000_s5 = inlined_call_operand.hbm [shape: f32[2,4,256], index: 5, kind: output, shape index: {}]  }
   0x1   :  { %11 = vsyncpa [#allocation3], 0 }
   0x2   :  { %13 = vsyncpa [#allocation3 + $0x1], 0 }
   0x3   :  { %14 = vsyncpa [#allocation4], 0 }
   0x4   :  { %16 = vsyncpa [#allocation4 + $0x1], 0  ;;  %s782_s18 = smov 0   ;;  %s784_s19 = smov 0  }
   0x5   :  { %s786_s20 = smov 0   ;;  %s788_s21 = smov 0  }
   0x6   :  { %s790_s22 = smov 0   ;;  %s792_s23 = smov 0  }
   0x7 LB: > { %s512_s24 = sadd.s32 4294967295, %s743_s23   ;;  %s513_s25 = sadd.s32 4294967294, %s743_s23   ;;  %s743_s23 = sphi %s792_s23, %s22_s23   ;;  %s739_s22 = sphi %s790_s22, %s1022_s22   ;;  %s735_s21 = sphi %s788_s21, %s1021_s21   ;;  %s731_s20 = sphi %s786_s20, %s1020_s20   ;;  %s727_s19 = sphi %s784_s19, %s1019_s19   ;;  %s723_s18 = sphi %s782_s18, %s1018_s18  }
   0x8   : > { %p77_p0 = scmp.ne.s32.totalorder %s727_s19, %s723_s18  ;;  %p816_p1 = scmp.eq.s32.totalorder %s512_s24, 0 }
   0x9   : > { %p820_p2 = scmp.eq.s32.totalorder %s512_s24, 1  ;;  %p172_p3 = scmp.eq.s32.totalorder %s513_s25, 1 }
   0xa   : > { %s1005_s26 = scalar_select %p816_p1, 1, 0 }
   0xb   : > { %p826_p4 = por %p816_p1, %p77_p0  ;;  %p514_p5 = scmp.ge.s32.totalorder %s743_s23, 1 }
   0xc   : > { %p831_p6 = por %p172_p3, %p77_p0  ;;  %p179_p7 = scmp.lt.s32.totalorder %s743_s23, 3 }
   0xd   : > { %s1007_s28 = scalar_select %p826_p4, 1, 0 }
   0xe   : > { %s1008_s29 = scalar_select %p831_p6, 1, 0 }
   0xf   : > { %s192_s7 = sshll.u32 %s995_s0, 4  ;;  %p839_p8 = pnand %p514_p5, %p179_p7  ;;  %s193_s7 = int_to_ptr.vmem [resolvable:$true] %s192_s7 }
  0x10   : > { %s34_s10 = sadd.s32 1, %s739_s22  ;;  %s64_s11 = sadd.s32 1, %s731_s20 }
  0x11   : > { %p539_p10 = pneg %p839_p8  ;;  %p36_p12 = scmp.ge.s32.totalorder %s34_s10, 2 }
  0x12   : > { %s612_s12 = scalar_lea.vmem %s193_s7, 16  ;;  %p620_p7 = scmp.lt.s32.totalorder %s193_s7, %s193_s7 }
  0x13   : > { %p848_p11 = pnand %p539_p10, %p816_p1  ;;  %p613_p13 = scmp.ne.s32.totalorder %s193_s7, %s612_s12 }
  0x14   : > { %p621_p6 = scmp.lt.s32.totalorder %s612_s12, %s612_s12 }
  0x15   : > { %p614_p0 = pneg %p848_p11 }
  0x16   : > { %p622_p9 = por %p621_p6, %p620_p7 }
  0x17   : > { %p615_p3 = pnand %p614_p0, %p613_p13 }
  0x19   : > { %p616_p5 = pneg %p615_p3 }
  0x1b   : > { %p623_p4 = pnand %p622_p9, %p616_p5 }
  0x1d   : > { %626 = shalt.err (!%p623_p4)
}
  0x1e   : > { %s745_s13 = smov [#allocation2]   ;;  %s1024_s10 = smov (%p36_p12, %s34_s10), 0 }
  0x1f   : > { %542 = dma.vmem_to_smem (!%p848_p11), %s193_s7, 16, %s745_s13, [#allocation5]  }
  0x20   : > { %p71_p10 = scmp.ne.s32.totalorder %s731_s20, %s727_s19  ;;  %p72_p6 = scmp.eq.s32.totalorder %s743_s23, 0 }
  0x21   : > { %s59_s14 = ssub.s32 %s739_s22, %s1024_s10  ;;  %p552_p4 = scmp.lt.s32.totalorder %s743_s23, 2 }
  0x22   : > { %p62_p9 = scmp.eq.s32.totalorder %s59_s14, 0  ;;  %p73_p13 = por %p72_p6, %p71_p10 }
  0x23   : > { %p868_p0 = por %p820_p2, %p71_p10  ;;  %s212_s16 = sand.u32 1, %s731_s20  }
  0x24   : > { %s874_s17 = scalar_select %p62_p9, %s731_s20, %s64_s11  }
  0x25   : > { %s1011_s15 = scalar_select %p868_p0, 1, 0 }
  0x26   : > { %s517_s24 = sshll.u32 %s212_s16, 3  ;;  %s529_s25 = sshll.u32 %s739_s22, 7 }
  0x27   : > { %s880_s7 = scalar_lea.hbm %s996_s1, %s529_s25  ;;  %s216_s9 = scalar_lea.vmem [#allocation6], %s517_s24 }
  0x28   : > { %s226_s27 = sshll.u32 %s216_s9, 4  ;;  %p884_p2 = pnand %p552_p4, %p73_p13  ;;  %s882_s27 = int_to_ptr.vmem [resolvable:$true] %s226_s27 }
  0x29   : > { %s213_s11 = scalar_lea.sflag [#allocation3], %s212_s16  ;;  %s627_s13 = scalar_lea.hbm %s880_s7, 128 }
  0x2a   : > { %p628_p11 = scmp.ne.s32.totalorder %s880_s7, %s627_s13  ;;  %p629_p12 = pneg %p884_p2 }
  0x2b   : > { %s632_s25 = scalar_lea.hbm %s996_s1, 256  ;;  %p633_p7 = scmp.lt.u32.totalorder %s880_s7, %s996_s1 }
  0x2c   : > { %p630_p3 = pnand %p629_p12, %p628_p11  ;;  %p634_p10 = scmp.lt.u32.totalorder %s632_s25, %s627_s13 }
  0x2d   : > { %p636_p4 = scmp.lt.u32.totalorder %s627_s13, %s880_s7 }
  0x2e   : > { %p631_p5 = pneg %p630_p3  ;;  %p635_p6 = por %p634_p10, %p633_p7 }
  0x30   : > { %p637_p9 = por %p636_p4, %p635_p6 }
  0x32   : > { %p638_p13 = pnand %p637_p9, %p631_p5 }
  0x34   : > { %641 = shalt.err (!%p638_p13)
}
  0x35   : > { %s642_s16 = scalar_lea.vmem %s882_s27, 128  ;;  %s746_s9 = smov [#allocation6]  }
  0x36   : > { %p643_p11 = scmp.ne.s32.totalorder %s882_s27, %s642_s16  ;;  %s647_s14 = sshll.u32 %s746_s9, 4  ;;  %s648_s14 = int_to_ptr.vmem [resolvable:$false] %s647_s14 }
  0x37   : > { %s649_s24 = scalar_lea.vmem %s648_s14, 256  ;;  %p650_p1 = scmp.lt.s32.totalorder %s882_s27, %s648_s14 }
  0x38   : > { %p645_p3 = pnand %p643_p11, %p629_p12  ;;  %p651_p7 = scmp.lt.s32.totalorder %s649_s24, %s642_s16 }
  0x3a   : > { %p646_p0 = pneg %p645_p3  ;;  %p652_p10 = por %p651_p7, %p650_p1 }
  0x3c   : > { %p653_p6 = pnand %p652_p10, %p646_p0 }
  0x3e   : > { %656 = shalt.err (!%p653_p6)
}
  0x3f   : > { %546 = dma.hbm_to_vmem [thread:$0]  (!%p884_p2), %s880_s7, 128, %s882_s27, %s213_s11  }
  0x40   : > { %235 = sbr.rel (%p839_p8) target bundleno = 242 (0xf2), region = 40  ;;  %p1013_p12 = scmp.ne.s32.totalorder (!%p839_p8), %s1005_s26, 0 }
  0x47   : > { %710 = dma.done.wait (%p1013_p12), [#allocation5], 16  }
  0x48   : > { %712 = vsyncadd (%p1013_p12), [#allocation5], 4294967280  ;;  %s920_s13 = sand.u32 1, %s727_s19   ;;  %p1014_p1 = scmp.ne.s32.totalorder %s1007_s28, 0 }
  0x49   : > { %s522_s12 = sshll.u32 %s920_s13, 3  ;;  %s242_s25 = scalar_lea.sflag [#allocation3], %s920_s13 }
  0x4a   : > { %s245_s7 = scalar_lea.vmem [#allocation6], %s522_s12 }
  0x4b   : > { %714 = dma.done.wait (%p1014_p1), %s242_s25, 128  }
  0x4c   : > { %716 = vsyncadd (%p1014_p1), %s242_s25, 4294967168 }
  0x4d   : > { %250 = sfence }
  0x4e   : > { %v277_v0 = vld [vmem:[%s997_s2] sm:$0xf]  ;;  %s275_s27 = sld [smem:[#allocation2 + %s735_s21]]  ;;  %v747_v1 = vmov 0   ;;  %v748_v2 = vmov 1   ;;  %v749_v6 = vmov 2   ;;  %v289_v10 = vlaneseq }
  0x4f   : > { %608 = vset.pattern.permute.xlu0 %v747_v1  ;;  %609 = vset.pattern.permute.xlu1 %v748_v2  ;;  %v279_v3 = vld [vmem:[%s999_s4] sm:$0xf]  ;;  %v750_v9 = vmov 3   ;;  %s530_s16 = sshll.u32 %s735_s21, 7  ;;  %s272_s9 = scalar_lea.vmem [#allocation7], %s522_s12 }
  0x50   : > { %285 = vperm.xlu0 %608, %v277_v0   ;;  %317 = vperm.xlu1 %609, %v277_v0   ;;  %v278_v4 = vld [vmem:[%s998_s3] sm:$0xf]  ;;  %v290_v11 = vshrl.u32 %v289_v10, 7  ;;  %s416_s14 = sshll.u32 %s272_s9, 4  ;;  %s400_s8 = scalar_lea.sflag [#allocation4], %s920_s13  ;;  %s948_s14 = int_to_ptr.vmem [resolvable:$true] %s416_s14 }
  0x51   : > { %v276_v14 = vld [vmem:[%s245_s7] sm:$0xff]  ;;  %s946_s7 = scalar_lea.hbm %s1000_s5, %s530_s16  ;;  %s657_s26 = scalar_lea.vmem %s948_s14, 128 }
  0x52   : > { %v291_v12 = vsub.s32 0, %v290_v11  ;;  %v295_v13 = vsub.s32 4, %v290_v11  ;;  %v322_v15 = vsub.s32 1, %v290_v11  ;;  %v326_v16 = vsub.s32 5, %v290_v11  ;;  %p658_p8 = scmp.ne.s32.totalorder %s948_s14, %s657_s26  ;;  %p1015_p0 = scmp.ne.s32.totalorder %s1011_s15, 0 }
  0x53   : > { %v348_v17 = vsub.s32 2, %v290_v11  ;;  %v352_v18 = vsub.s32 6, %v290_v11  ;;  %v374_v27 = vsub.s32 3, %v290_v11  ;;  %v378_v28 = vsub.s32 7, %v290_v11  ;;  %s751_s21 = smov [#allocation7]  }
  0x54   : > { %v280_v5 = vstv %s275_s27  ;;  %610 = vset.pattern.permute.xlu1 %v749_v6  ;;  %v292_v19 = vrot.slane %v276_v14, %v291_v12  ;;  %v296_v20 = vrot.slane %v276_v14, %v295_v13  ;;  %v323_v22 = vrot.slane %v276_v14, %v322_v15  ;;  %p659_p2 = pnand %p658_p8, %p1015_p0  ;;  %s661_s12 = sshll.u32 %s751_s21, 4  ;;  %s662_s12 = int_to_ptr.vmem [resolvable:$false] %s661_s12 }
  0x55   : > { %v281_v7 = vmul.f32 %v280_v5, %v279_v3  ;;  %343 = vperm.xlu1 %610, %v277_v0   ;;  %v327_v23 = vrot.slane %v276_v14, %v326_v16  ;;  %v349_v24 = vrot.slane %v276_v14, %v348_v17  ;;  %v353_v25 = vrot.slane %v276_v14, %v352_v18  ;;  %s663_s27 = scalar_lea.vmem %s662_s12, 256  ;;  %p664_p4 = scmp.lt.s32.totalorder %s948_s14, %s662_s12 }
  0x56   : > { %v302_v29 = vrot.slane %v292_v19, %v291_v12  ;;  %v306_v30 = vrot.slane %v296_v20, %v291_v12  ;;  %v333_v31 = vrot.slane %v323_v22, %v322_v15  ;;  %v375_v36 = vrot.slane %v276_v14, %v374_v27  ;;  %p660_p5 = pneg %p659_p2  ;;  %p665_p9 = scmp.lt.s32.totalorder %s663_s27, %s657_s26 }
  0x57   : > { %v282_v8 = vadd.f32 %v281_v7, %v278_v4  ;;  %v337_v32 = vrot.slane %v327_v23, %v322_v15  ;;  %v359_v33 = vrot.slane %v349_v24, %v348_v17  ;;  %v363_v34 = vrot.slane %v353_v25, %v348_v17 }
  0x58   : > { %v379_v37 = vrot.slane %v276_v14, %v378_v28  ;;  %v385_v47 = vrot.slane %v375_v36, %v374_v27  ;;  %p666_p13 = por %p665_p9, %p664_p4 }
  0x59   : > { %311 = vperm.xlu0 %608, %v282_v8  }
  0x5a   : > { %v389_v48 = vrot.slane %v379_v37, %v374_v27  ;;  %p667_p11 = pnand %p666_p13, %p660_p5 }
  0x5d   : > { %611 = vset.pattern.permute.xlu0 %v750_v9 }
  0x5e   : > { %369 = vperm.xlu0 %611, %v277_v0  }
  0xcf   : > { %v318_v21 = vpop.permute.xlu1 %317  ;;  %v286_v26 = vpop.permute.xlu0 %285 }
  0xd0   : > { %v307_v38 = vmul.f32 %v302_v29, %v286_v26  ;;  %v308_v39 = vmul.f32 %v306_v30, %v286_v26  ;;  %v338_v40 = vmul.f32 %v333_v31, %v318_v21  ;;  %v339_v41 = vmul.f32 %v337_v32, %v318_v21 }
  0xd4   : > { %v344_v35 = vpop.permute.xlu1 %343 }
  0xd5   : > { %v364_v45 = vmul.f32 %v359_v33, %v344_v35  ;;  %v365_v46 = vmul.f32 %v363_v34, %v344_v35 }
  0xd8   : > { %v312_v42 = vpop.permute.xlu0 %311 }
  0xd9   : > { %v314_v43 = vadd.f32 %v312_v42, %v307_v38  ;;  %v315_v44 = vadd.f32 %v312_v42, %v308_v39 }
  0xdb   : > { %v340_v49 = vadd.f32 %v338_v40, %v314_v43  ;;  %v341_v50 = vadd.f32 %v339_v41, %v315_v44 }
  0xdd   : > { %v366_v51 = vadd.f32 %v364_v45, %v340_v49  ;;  %v367_v52 = vadd.f32 %v365_v46, %v341_v50  ;;  %v370_v53 = vpop.permute.xlu0 %369 }
  0xde   : > { %v390_v54 = vmul.f32 %v385_v47, %v370_v53  ;;  %v391_v55 = vmul.f32 %v389_v48, %v370_v53 }
  0xe0   : > { %v392_v56 = vadd.f32 %v390_v54, %v366_v51  ;;  %v393_v57 = vadd.f32 %v391_v55, %v367_v52 }
  0xe2   : > { %v396_v58 = vcombine.low %v392_v56, %v393_v57 }
  0xe4   : > { %398 = vst [vmem:[%s272_s9] sm:$0xff] %v396_v58 }
  0xe5   : > { %670 = shalt.err (!%p667_p11)
}
  0xe6   : > { %s671_s13 = scalar_lea.hbm %s946_s7, 128  ;;  %s675_s6 = scalar_lea.hbm %s1000_s5, 256 }
  0xe7   : > { %p672_p3 = scmp.ne.s32.totalorder %s946_s7, %s671_s13  ;;  %p676_p6 = scmp.lt.u32.totalorder %s946_s7, %s1000_s5 }
  0xe8   : > { %p677_p12 = scmp.lt.u32.totalorder %s675_s6, %s671_s13  ;;  %p679_p8 = scmp.lt.u32.totalorder %s671_s13, %s946_s7 }
  0xe9   : > { %p673_p7 = pnand %p672_p3, %p1015_p0 }
  0xea   : > { %p678_p1 = por %p677_p12, %p676_p6 }
  0xeb   : > { %p674_p10 = pneg %p673_p7 }
  0xec   : > { %p680_p2 = por %p679_p8, %p678_p1 }
  0xee   : > { %p681_p5 = pnand %p680_p2, %p674_p10 }
  0xf0   : > { %684 = shalt.err (!%p681_p5)
}
  0xf1   : > { %537 = dma.vmem_to_hbm [thread:$0]  (%p1015_p0), %s948_s14, 128, %s946_s7, %s400_s8  }
  0xf2 PF: > { %s428_s9 = sand.u32 1, %s723_s18   ;;  %p1016_p4 = scmp.ne.s32.totalorder %s1008_s29, 0 }
  0xf3   : > { %p1017_p9 = scmp.ge.s32.totalorder %s743_s23, 2  ;;  %s429_s24 = scalar_lea.sflag [#allocation4], %s428_s9 }
  0xf5   : > { %p548_p13 = pnand %p1017_p9, %p1016_p4 }
  0xf7   : > { %718 = dma.done.wait (!%p548_p13), %s429_s24, 128  }
  0xf8   : > { %720 = vsyncadd (!%p548_p13), %s429_s24, 4294967168  ;;  %s22_s23 = sadd.s32 1, %s743_s23   ;;  %s1018_s18 = smov %s727_s19 }
  0xf9   : > { %p19_p11 = scmp.ge.s32.totalorder %s22_s23, 4   ;;  %s1019_s19 = smov %s731_s20 }
  0xfa   : > { %s1020_s20 = smov %s874_s17  ;;  %s1021_s21 = smov %s739_s22 }
  0xfb   : > { %s1022_s22 = smov %s1024_s10  ;;  %21 = sbr.rel (!%p19_p11) target bundleno = 7 (0x7), region = 90 }
 0x102   :  { %434 = vsyncpa [#allocation3], 1 }
 0x103   :  { %436 = vsyncpa [#allocation3 + $0x1], 1 }
 0x104   :  { %437 = vsyncpa [#allocation4], 1 }
 0x105   :  { %439 = vsyncpa [#allocation4 + $0x1], 1 }
 0x106   :  { %440 = vsyncpa [#allocation5], 1 }
 0x107   :  { %442 = vsyncpa [#allocation5 + $0x1], 1 }

</bundles_post_ra>
